<compile_context>
chip_gen: v7x
topology: tpu7x:2x2x1
jax: 0.10.0
libtpu: 0.0.40
codegen_flags: <defaults>
</compile_context>

<pallas_src>
import jax
import jax.numpy as jnp
from jax.experimental import pallas as pl
from jax.experimental.pallas import tpu as pltpu


def _round_up(x, m):
    return (x + m - 1) // m * m


def _cdiv(a, b):
    return (a + b - 1) // b


# --------------------------------------------------------------------------- #
# Kernels
# --------------------------------------------------------------------------- #
def _ffn_kernel_f32_out(x_ref, w1_ref, b1_ref, w2_ref, b2_ref, o_ref):
    """f32-output path: accumulate the streamed-hidden reduction directly into
    the output block (same block index for every k -> stays VMEM-resident)."""
    k = pl.program_id(1)

    @pl.when(k == 0)
    def _():
        # Initialize the accumulator (= output block) with the second bias.
        o_ref[...] = jnp.broadcast_to(b2_ref[...], o_ref.shape)

    # First matmul (bf16 x bf16 -> f32 on the MXU) + bias + ReLU.
    xb = x_ref[...].astype(jnp.bfloat16)          # in-kernel cast (VPU, free-ish)
    h = jnp.dot(xb, w1_ref[...], preferred_element_type=jnp.float32)
    # ReLU intermediate quantized to bf16 for the second MXU matmul (f32 acc).
    h = jnp.maximum(h + b1_ref[...], 0.0).astype(jnp.bfloat16)

    # Second matmul: accumulate this hidden tile's partial product.
    o_ref[...] += jnp.dot(h, w2_ref[...], preferred_element_type=jnp.float32)
    # TODO(synk): training-mode dropout would use pltpu.prng_seed /
    # prng_random_bits; eval-mode dropout is identity, so nothing to do.


def _ffn_kernel_lowp_out(x_ref, w1_ref, b1_ref, w2_ref, b2_ref, o_ref, acc_ref):
    """Non-f32-output path: accumulate in an f32 VMEM scratch, cast once."""
    k = pl.program_id(1)

    @pl.when(k == 0)
    def _():
        acc_ref[...] = jnp.broadcast_to(b2_ref[...], acc_ref.shape)

    xb = x_ref[...].astype(jnp.bfloat16)
    h = jnp.dot(xb, w1_ref[...], preferred_element_type=jnp.float32)
    h = jnp.maximum(h + b1_ref[...], 0.0).astype(jnp.bfloat16)
    acc_ref[...] += jnp.dot(h, w2_ref[...], preferred_element_type=jnp.float32)

    @pl.when(k == pl.num_programs(1) - 1)
    def _():
        o_ref[...] = acc_ref[...].astype(o_ref.dtype)


# --------------------------------------------------------------------------- #
# Tile planning (per-generation VMEM budget)
# --------------------------------------------------------------------------- #
def _vmem_capacity_bytes():
    try:
        info = pltpu.get_tpu_info()
        cap = getattr(info, "vmem_capacity_bytes", None)
        if cap:
            return int(cap)
    except Exception:
        pass
    # Conservative fallback that is safe on every generation (v7x per-TC VMEM).
    return 64 * 1024 * 1024


def _plan_tiles(M, n_emb, hidden, x_itemsize, out_itemsize, need_acc, budget):
    # tk: largest multiple of 128 dividing `hidden` (capped at 2048) such that
    # the double-buffered bf16 W1/W2 blocks use at most ~half the budget.
    cands = [d for d in range(128, min(hidden, 2048) + 1, 128) if hidden % d == 0]
    if not cands:
        cands = [hidden]                      # odd hidden: keep weights whole
    tk = cands[0]
    for d in reversed(cands):
        if 8 * n_emb * d <= budget // 2:      # 2 bufs * (W1 + W2 blocks) * 2 B
            tk = d
            break

    # tm: fill the remaining budget.  Multiples of 128 when large (MXU-shaped),
    # multiples of 16 otherwise (bf16 sublane packing).
    fixed = 8 * n_emb * tk + 2 * 4 * 8 * (tk + n_emb)          # weights + biases
    per_row = (2 * n_emb * x_itemsize                          # x block (2 bufs)
               + 2 * n_emb * out_itemsize                      # out block (2 bufs)
               + (4 * n_emb if need_acc else 0))               # f32 acc scratch
    tm_fit = max((budget - fixed) // per_row, 16)
    tm = max(16, min(1024, tm_fit))
    tm = (tm // 128) * 128 if tm >= 128 else (tm // 16) * 16
    tm = min(tm, _round_up(M, 16))
    # Keep >= 2 row tiles when there is enough work (v7x: shard across both TCs).
    if M > 256 and _round_up(M, tm) // tm < 2:
        tm = _round_up(_cdiv(M, 2), 16)
    return tm, tk


# --------------------------------------------------------------------------- #
# Wrapper
# --------------------------------------------------------------------------- #
def ffn_forward(x, w1, b1, w2, b2, *, tm=None, tk=None, vmem_limit_bytes=None):
    """FFN forward: dropout(relu(x @ W1 + b1) @ W2 + b2), eval-mode dropout.

    x : (B, T, n_emb), any float dtype (cast to bf16 inside the kernel).
    w1: (n_emb, hidden), w2: (hidden, n_emb).  Store these as bf16 to avoid a
        per-call HBM cast pass; other dtypes are cast here once as a fallback.
    """
    B, T, n_emb = x.shape
    hidden = w1.shape[1]
    out_dtype = x.dtype
    out_itemsize = x.dtype.itemsize
    need_acc = out_dtype != jnp.float32

    M = B * T
    cap = _vmem_capacity_bytes()
    budget = int(cap * 0.70)                 # planning budget
    if vmem_limit_bytes is None:
        vmem_limit_bytes = int(cap * 0.85)   # compiler limit with headroom

    auto_tm, auto_tk = _plan_tiles(M, n_emb, hidden, x.dtype.itemsize,
                                   out_itemsize, need_acc, budget)
    tm = auto_tm if tm is None else tm
    tk = auto_tk if tk is None else tk

    M_pad = _round_up(M, tm)
    x2d = x.reshape(M, n_emb)
    if M_pad != M:
        x2d = jnp.pad(x2d, ((0, M_pad - M), (0, 0)))

    # Matmul operands in bf16 (MXU peak, half the weight DMA).  Only cast if
    # the caller did not already store bf16 weights.
    w1_bf = w1 if w1.dtype == jnp.bfloat16 else w1.astype(jnp.bfloat16)
    w2_bf = w2 if w2.dtype == jnp.bfloat16 else w2.astype(jnp.bfloat16)
    b1_f32 = b1.astype(jnp.float32).reshape(1, hidden)
    b2_f32 = b2.astype(jnp.float32).reshape(1, n_emb)

    grid = (M_pad // tm, hidden // tk)
    n_row_tiles = grid[0]

    flops = 2 * 2 * M_pad * n_emb * hidden                     # two GEMMs
    bytes_accessed = (x2d.size * x2d.dtype.itemsize
                      + n_row_tiles * (w1_bf.size + w2_bf.size) * 2  # re-streamed
                      + b1_f32.size * 4 + b2_f32.size * 4
                      + M_pad * n_emb * out_itemsize)

    kernel = _ffn_kernel_lowp_out if need_acc else _ffn_kernel_f32_out
    scratch = [pltpu.VMEM((tm, n_emb), jnp.float32)] if need_acc else []

    out = pl.pallas_call(
        kernel,
        out_shape=jax.ShapeDtypeStruct((M_pad, n_emb), out_dtype),
        grid_spec=pltpu.PrefetchScalarGridSpec(
            num_scalar_prefetch=0,
            grid=grid,
            in_specs=[
                pl.BlockSpec((tm, n_emb), lambda i, k: (i, 0)),   # x row tile
                pl.BlockSpec((n_emb, tk), lambda i, k: (0, k)),   # W1 hidden tile
                pl.BlockSpec((1, tk), lambda i, k: (0, k)),       # b1 hidden tile
                pl.BlockSpec((tk, n_emb), lambda i, k: (k, 0)),   # W2 hidden tile
                pl.BlockSpec((1, n_emb), lambda i, k: (0, 0)),    # b2
            ],
            out_specs=pl.BlockSpec((tm, n_emb), lambda i, k: (i, 0)),
            scratch_shapes=scratch,
        ),
        compiler_params=pltpu.CompilerParams(
            dimension_semantics=("parallel", "arbitrary"),
            vmem_limit_bytes=vmem_limit_bytes,
        ),
        cost_estimate=pl.CostEstimate(
            flops=flops, transcendentals=0, bytes_accessed=bytes_accessed),
    )(x2d, w1_bf, b1_f32, w2_bf, b2_f32)

    return out[:M].reshape(B, T, n_emb)


def init_params(key, n_embedding, factor=4):
    """Deterministic init mimicking nn.Linear's uniform(-1/sqrt(in), 1/sqrt(in))."""
    hidden = n_embedding * factor
    k1, k2, k3, k4 = jax.random.split(key, 4)
    bound1 = 1.0 / (n_embedding ** 0.5)
    bound2 = 1.0 / (hidden ** 0.5)
    w1 = jax.random.uniform(k1, (n_embedding, hidden), jnp.float32, -bound1, bound1)
    b1 = jax.random.uniform(k2, (hidden,), jnp.float32, -bound1, bound1)
    w2 = jax.random.uniform(k3, (hidden, n_embedding), jnp.float32, -bound2, bound2)
    b2 = jax.random.uniform(k4, (n_embedding,), jnp.float32, -bound2, bound2)
    return w1, b1, w2, b2


if __name__ == "__main__":
    key = jax.random.PRNGKey(0)
    kx, kp = jax.random.split(key)

    batch, seq, n_embedding, factor = 2, 8, 32, 4
    x = jax.random.normal(kx, (batch, seq, n_embedding), jnp.float32)
    w1, b1, w2, b2 = init_params(kp, n_embedding, factor)

    # Weights stored as bf16 (done once, outside the forward call).
    w1_bf = w1.astype(jnp.bfloat16)
    w2_bf = w2.astype(jnp.bfloat16)

    y = ffn_forward(x, w1_bf, b1, w2_bf, b2)
    y = jax.block_until_ready(y)

    # Reference in plain JAX f32 (same math as the PyTorch module in eval mode).
    # Tolerance accounts for bf16 matmul operands (x, W1, W2 and the ReLU
    # intermediate) with f32 MXU accumulation.
    ref = jnp.maximum(x.reshape(-1, n_embedding) @ w1 + b1, 0.0) @ w2 + b2
    ref = ref.reshape(batch, seq, n_embedding)
    assert jnp.allclose(y, ref, atol=5e-2, rtol=5e-2), "mismatch vs reference"

    print("KERNEL_OK")
</pallas_src>

<mosaic_0001>
module attributes {stable_mosaic.version = 11 : i64} {
  func.func @_ffn_kernel_f32_out(%arg0: i32, %arg1: i32, %arg2: memref<16x32xf32, #tpu.memory_space<vmem>>, %arg3: memref<32x128xbf16, #tpu.memory_space<vmem>>, %arg4: memref<1x128xf32, #tpu.memory_space<vmem>>, %arg5: memref<128x32xbf16, #tpu.memory_space<vmem>>, %arg6: memref<1x32xf32, #tpu.memory_space<vmem>>, %arg7: memref<16x32xf32, #tpu.memory_space<vmem>>) attributes {dimension_semantics = [#tpu.dimension_semantics<parallel>, #tpu.dimension_semantics<arbitrary>], iteration_bounds = array<i64: 1, 1>, scalar_prefetch = 0 : i64, scratch_operands = 0 : i64, tpu.core_type = #tpu.core_type<tc>, window_params = [{transform_indices = @transform_0, window_bounds = array<i64: 16, 32>}, {transform_indices = @transform_1, window_bounds = array<i64: 32, 128>}, {transform_indices = @transform_2, window_bounds = array<i64: 1, 128>}, {transform_indices = @transform_3, window_bounds = array<i64: 128, 32>}, {pipeline_mode = #tpu.pipeline_mode<synchronous>, transform_indices = @transform_4, window_bounds = array<i64: 1, 32>}, {transform_indices = @transform_5, window_bounds = array<i64: 16, 32>}]} {
    %c0_i32 = arith.constant 0 : i32
    %0 = arith.cmpi eq, %arg1, %c0_i32 : i32
    %1 = arith.extui %0 : i1 to i32
    %c0_i32_0 = arith.constant 0 : i32
    %2 = arith.cmpi ne, %1, %c0_i32_0 : i32
    scf.if %2 {
      %c0_14 = arith.constant 0 : index
      %c0_15 = arith.constant 0 : index
      %18 = vector.load %arg6[%c0_14, %c0_15] : memref<1x32xf32, #tpu.memory_space<vmem>>, vector<1x32xf32>
      %19 = vector.shape_cast %18 : vector<1x32xf32> to vector<1x32xf32>
      %20 = vector.broadcast %19 : vector<1x32xf32> to vector<16x32xf32>
      %c0_16 = arith.constant 0 : index
      %c0_17 = arith.constant 0 : index
      %21 = vector.load %arg7[%c0_16, %c0_17] : memref<16x32xf32, #tpu.memory_space<vmem>>, vector<16x32xf32>
      tpu.vector_store %arg7[%c0_16, %c0_17], %20 {strides = array<i32>} : memref<16x32xf32, #tpu.memory_space<vmem>>, vector<16x32xf32>,
    } else {
    }
    %c0 = arith.constant 0 : index
    %c0_1 = arith.constant 0 : index
    %3 = vector.load %arg2[%c0, %c0_1] : memref<16x32xf32, #tpu.memory_space<vmem>>, vector<16x32xf32>
    %4 = arith.truncf %3 : vector<16x32xf32> to vector<16x32xbf16>
    %c0_2 = arith.constant 0 : index
    %c0_3 = arith.constant 0 : index
    %5 = vector.load %arg3[%c0_2, %c0_3] : memref<32x128xbf16, #tpu.memory_space<vmem>>, vector<32x128xbf16>
    %cst = arith.constant dense<0.000000e+00> : vector<16x128xf32>
    %6 = tpu.matmul %4, %5, %cst {dimension_numbers = #tpu.dot_dimension_numbers<[1], [0], [0], [1], [0, 0, 1, 1], [], []>} : vector<16x32xbf16>, vector<32x128xbf16>, vector<16x128xf32> -> vector<16x128xf32>
    %c0_4 = arith.constant 0 : index
    %c0_5 = arith.constant 0 : index
    %7 = vector.load %arg4[%c0_4, %c0_5] : memref<1x128xf32, #tpu.memory_space<vmem>>, vector<1x128xf32>
    %8 = vector.broadcast %7 : vector<1x128xf32> to vector<16x128xf32>
    %9 = arith.addf %6, %8 : vector<16x128xf32>
    %cst_6 = arith.constant 0.000000e+00 : f32
    %10 = vector.broadcast %cst_6 : f32 to vector<16x128xf32>
    %11 = arith.maximumf %9, %10 : vector<16x128xf32>
    %12 = arith.truncf %11 : vector<16x128xf32> to vector<16x128xbf16>
    %c0_7 = arith.constant 0 : index
    %c0_8 = arith.constant 0 : index
    %13 = vector.load %arg7[%c0_7, %c0_8] : memref<16x32xf32, #tpu.memory_space<vmem>>, vector<16x32xf32>
    %c0_9 = arith.constant 0 : index
    %c0_10 = arith.constant 0 : index
    %14 = vector.load %arg5[%c0_9, %c0_10] : memref<128x32xbf16, #tpu.memory_space<vmem>>, vector<128x32xbf16>
    %cst_11 = arith.constant dense<0.000000e+00> : vector<16x32xf32>
    %15 = tpu.matmul %12, %14, %cst_11 {dimension_numbers = #tpu.dot_dimension_numbers<[1], [0], [0], [1], [0, 0, 1, 1], [], []>} : vector<16x128xbf16>, vector<128x32xbf16>, vector<16x32xf32> -> vector<16x32xf32>
    %16 = arith.addf %13, %15 : vector<16x32xf32>
    %c0_12 = arith.constant 0 : index
    %c0_13 = arith.constant 0 : index
    %17 = vector.load %arg7[%c0_12, %c0_13] : memref<16x32xf32, #tpu.memory_space<vmem>>, vector<16x32xf32>
    tpu.vector_store %arg7[%c0_12, %c0_13], %16 {strides = array<i32>} : memref<16x32xf32, #tpu.memory_space<vmem>>, vector<16x32xf32>,
    return
  }
  func.func @transform_0(%arg0: i32, %arg1: i32) -> (i32, i32) {
    %c0_i32 = arith.constant 0 : i32
    %c0_i32_0 = arith.constant 0 : i32
    return %arg0, %c0_i32 : i32, i32
  }
  func.func @transform_1(%arg0: i32, %arg1: i32) -> (i32, i32) {
    %c0_i32 = arith.constant 0 : i32
    %c0_i32_0 = arith.constant 0 : i32
    return %c0_i32, %arg1 : i32, i32
  }
  func.func @transform_2(%arg0: i32, %arg1: i32) -> (i32, i32) {
    %c0_i32 = arith.constant 0 : i32
    %c0_i32_0 = arith.constant 0 : i32
    return %c0_i32, %arg1 : i32, i32
  }
  func.func @transform_3(%arg0: i32, %arg1: i32) -> (i32, i32) {
    %c0_i32 = arith.constant 0 : i32
    %c0_i32_0 = arith.constant 0 : i32
    return %arg1, %c0_i32 : i32, i32
  }
  func.func @transform_4(%arg0: i32, %arg1: i32) -> (i32, i32) {
    %c0_i32 = arith.constant 0 : i32
    %c0_i32_0 = arith.constant 0 : i32
    %c0_i32_1 = arith.constant 0 : i32
    return %c0_i32, %c0_i32_0 : i32, i32
  }
  func.func @transform_5(%arg0: i32, %arg1: i32) -> (i32, i32) {
    %c0_i32 = arith.constant 0 : i32
    %c0_i32_0 = arith.constant 0 : i32
    return %arg0, %c0_i32 : i32, i32
  }
}

</mosaic_0001>

<bundles_post_ra>
// kernel: tpu_custom_call.1
= control target key start
LH: loop header
LB: loop body
LE: loop exit
PB: predicated region body
PF: predicated region fallthrough
CT: control target
= control target key end

     0   :  { %v329_v1 = vmov 0.0   ;;  %vm330_vm0 = vmmov 0   ;;  %vm33_vm1 = vcmask 261120   ;;  %s423_s0 = inlined_call_operand.vmem [shape: f32[16,32], index: 0, kind: input, shape index: {}]   ;;  %s424_s1 = inlined_call_operand.vmem [shape: bf16[32,128], index: 1, kind: input, shape index: {}]   ;;  %s425_s2 = inlined_call_operand.vmem [shape: f32[1,128], index: 2, kind: input, shape index: {}]   ;;  %s426_s3 = inlined_call_operand.vmem [shape: bf16[128,32], index: 3, kind: input, shape index: {}]   ;;  %s427_s4 = inlined_call_operand.vmem [shape: f32[1,32], index: 4, kind: input, shape index: {}]   ;;  %s428_s5 = inlined_call_operand.hbm [shape: f32[16,32], index: 5, kind: output, shape index: {}]  }
   0x1   :  { %v295_v0 = vld [vmem:[%s424_s1] sm:$0xff]   ;;  %262 = vmatprep.subr.bf16.mxu0 %v329_v1  ;;  %v296_v2 = vld [vmem:[%s424_s1 + $0x8] sm:$0xff]   ;;  %270 = vmatprep.subr.bf16.mxu1 %v329_v1  ;;  %v299_v8 = vld [vmem:[%s426_s3 + $0x10] sm:$0xff]  }
   0x2   :  { %263 = vmatpush3.bf16.msra.mxu0 %v295_v0  ;;  %266 = vmatprep.mubr.msk.bf16.mxu0 %vm330_vm0, %v329_v1  ;;  %v36_v3 = vld [vmem:[%s423_s0] sm:$0xff]  ;;  %v37_v4 = vld [vmem:[%s423_s0 + $0x8] sm:$0xff] }
   0x3   :  { %264 = vmatprep.subr.bf16.mxu0 %v329_v1  ;;  %v297_v5 = vld [vmem:[%s426_s3] sm:$0xff]   ;;  %286 = vmatprep.mubr.msk.bf16.mxu1 %vm330_vm0, %v329_v1  ;;  %v38_v6 = vpack.c.bf16 %v37_v4, %v36_v3  ;;  %v298_v7 = vld [vmem:[%s426_s3 + $0x8] sm:$0xff]  }
   0x4   :  { %271 = vmatpush3.bf16.msra.mxu1 %v297_v5 }
   0x5   :  { %272 = vmatprep.subr.bf16.mxu1 %v329_v1 }
   0x6   :  { %265 = vmatpush3.bf16.msra.mxu0 %v296_v2 }
   0x8   :  { %273 = vmatpush3.bf16.msra.mxu1 %v298_v7 }
   0x9   :  { %267 = vmatmul.mubr.msk.bf16.vlgmr.msra.gmra.mrb[0].mxu0 %vm33_vm1, %v38_v6  ;;  %274 = vmatprep.subr.bf16.mxu1 %v329_v1 }
   0xa   :  { %10 = vsyncpa [#allocation3], 0  ;;  %v300_v9 = vld [vmem:[%s426_s3 + $0x18] sm:$0xff]   ;;  %v301_v10 = vld [vmem:[%s426_s3 + $0x20] sm:$0xff]  }
   0xb   :  { %v302_v11 = vld [vmem:[%s426_s3 + $0x28] sm:$0xff]   ;;  %v303_v12 = vld [vmem:[%s426_s3 + $0x30] sm:$0xff]   ;;  %v304_v13 = vld [vmem:[%s426_s3 + $0x38] sm:$0xff]   ;;  %s331_s3 = smov [#allocation2]  }
   0xc   :  { %275 = vmatpush3.bf16.msra.mxu1 %v299_v8  ;;  %v237_v14 = vld [vmem:[%s427_s4] ss:$0 sm:$0xff]  ;;  %s226_s4 = sshll.u32 %s331_s3, 4  ;;  %s227_s4 = int_to_ptr.vmem [resolvable:$true] %s226_s4 }
   0xd   :  { %276 = vmatprep.subr.bf16.mxu1 %v329_v1  ;;  %34 = vst.msk [vmem:[#allocation2] sm:$0xff] %vm33_vm1, %v237_v14  ;;  %35 = vst.msk [vmem:[#allocation2 + $0x8] sm:$0xff] %vm33_vm1, %v237_v14  ;;  %v238_v15 = vld [vmem:[%s425_s2] ss:$0 sm:$0xff]  ;;  %s305_s2 = scalar_lea.vmem %s227_s4, 256  ;;  %p310_p1 = scmp.lt.s32.totalorder %s227_s4, %s227_s4 }
   0xe   :  { %p306_p0 = scmp.ne.s32.totalorder %s227_s4, %s305_s2  ;;  %p311_p2 = scmp.lt.s32.totalorder %s305_s2, %s305_s2 }
  0x10   :  { %277 = vmatpush3.bf16.msra.mxu1 %v300_v9  ;;  %p312_p3 = por %p311_p2, %p310_p1 }
  0x11   :  { %278 = vmatprep.subr.bf16.mxu1 %v329_v1 }
  0x12   :  { %p313_p4 = pnand %p312_p3, %p306_p0 }
  0x14   :  { %279 = vmatpush3.bf16.msra.mxu1 %v301_v10  ;;  %v110_v25 = vld [vmem:[#allocation2] sm:$0xff]  ;;  %v111_v27 = vld [vmem:[#allocation2 + $0x8] sm:$0xff] }
  0x15   :  { %280 = vmatprep.subr.bf16.mxu1 %v329_v1 }
  0x18   :  { %281 = vmatpush3.bf16.msra.mxu1 %v302_v11 }
  0x19   :  { %282 = vmatprep.subr.bf16.mxu1 %v329_v1 }
  0x1c   :  { %283 = vmatpush3.bf16.msra.mxu1 %v303_v12 }
  0x1d   :  { %284 = vmatprep.subr.bf16.mxu1 %v329_v1 }
  0x20   :  { %285 = vmatpush3.bf16.msra.mxu1 %v304_v13 }
  0xdc   :  { %v100_v16 = vpop.f32.mrb[0].mxu0 }
  0xdd   :  { %v101_v17 = vadd.f32 %v238_v15, %v100_v16  ;;  %v268_v18 = vpop.f32.mrb[1].mxu0 }
  0xde   :  { %v103_v19 = vpop.f32.mrb[2].mxu0 }
  0xdf   :  { %v104_v20 = vadd.f32 %v238_v15, %v103_v19  ;;  %v269_v21 = vpop.f32.mrb[3].mxu0  ;;  %v107_v22 = vmax.f32 %v101_v17, 0.0 }
  0xe1   :  { %v108_v23 = vmax.f32 %v104_v20, 0.0 }
  0xe3   :  { %v109_v24 = vpack.c.bf16 %v108_v23, %v107_v22 }
  0xe5   :  { %287 = vmatmul.mubr.bf16.vlgmr.msra.gmra.mrb[0].mxu1 %v109_v24 }
 0x1b8   :  { %v210_v26 = vpop.f32.mrb[0].mxu1 }
 0x1b9   :  { %v217_v28 = vadd.f32 %v210_v26, %v110_v25  ;;  %v288_v29 = vpop.f32.mrb[1].mxu1 }
 0x1ba   :  { %v213_v30 = vpop.f32.mrb[2].mxu1 }
 0x1bb   :  { %219 = vst.msk [vmem:[#allocation2] sm:$0xff] %vm33_vm1, %v217_v28  ;;  %v218_v31 = vadd.f32 %v213_v30, %v111_v27  ;;  %v289_v32 = vpop.f32.mrb[3].mxu1 }
 0x1bd   :  { %220 = vst.msk [vmem:[#allocation2 + $0x8] sm:$0xff] %vm33_vm1, %v218_v31 }
 0x1be   :  { %316 = shalt.err (!%p313_p4)
}
 0x1bf   :  { %s317_s21 = scalar_lea.hbm %s428_s5, 256 }
 0x1c0   :  { %p318_p5 = scmp.ne.s32.totalorder %s428_s5, %s317_s21  ;;  %p321_p6 = scmp.lt.u32.totalorder %s317_s21, %s428_s5 }
 0x1c2   :  { %p323_p7 = pnand %p321_p6, %p318_p5 }
 0x1c4   :  { %326 = shalt.err (!%p323_p7)
}
 0x1c5   :  { %s332_s26 = smov 128   ;;  %s333_s27 = smov 8  }
 0x1c6   :  { %232 = dma.vmem_to_hbm [thread:$0]  %s227_s4, 256, %s428_s5, [#allocation3], %s332_s26, %s332_s26, %s333_s27  }
 0x1c7   :  { %327 = dma.done.wait [#allocation3], 256  }
 0x1c8   :  { %328 = vsyncadd [#allocation3], 4294967040 }
 0x1c9   :  { %236 = vsyncpa [#allocation3], 1 }

</bundles_post_ra>
